<compile_context>
chip_gen: v7x
topology: tpu7x:2x2x1
jax: 0.10.0
libtpu: 0.0.40
codegen_flags: <defaults>
</compile_context>

<pallas_src>
import numpy as np
import jax
import jax.numpy as jnp
from jax.experimental import pallas as pl
from jax.experimental.pallas import tpu as pltpu

EPS = 1e-5          # nn.LayerNorm default eps
K_INTERP = 3        # pointops.interpolation uses 3 nearest neighbors


def _round_up(x, m):
    return (x + m - 1) // m * m


# ----------------------------- Pallas kernels -------------------------------
def _ln_linear_kernel(x_ref, w_ref, b_ref, o_ref):
    # x_ref: (TM, C_IN); w_ref: (C_IN, C_OUT) = gamma-folded W^T;
    # b_ref: (1, C_OUT) = beta @ W^T + bias.
    x = x_ref[...].astype(jnp.float32)
    mean = jnp.mean(x, axis=-1, keepdims=True)
    var = jnp.mean(x * x, axis=-1, keepdims=True) - mean * mean   # single pass
    xn = (x - mean) * jax.lax.rsqrt(var + EPS)
    y = jnp.dot(xn, w_ref[...], preferred_element_type=jnp.float32) + b_ref[...]
    o_ref[...] = y.astype(o_ref.dtype)


def _upsample_fused_kernel(sf_ref, g_ref, wgt_ref, w_ref, b_ref, o_ref):
    # sf_ref : (TM, C_OUT)        fine support feats (bf16 over HBM)
    # g_ref  : (K, TM, C_OUT) f32 gathered coarse linear2 feats for the K NNs
    # wgt_ref: (TM, K) f32        inverse-distance interpolation weights
    # w_ref  : (C_OUT, C_OUT) f32 gamma1-folded W1^T
    # b_ref  : (1, C_OUT) f32     beta1 @ W1^T + bias1
    x = sf_ref[...].astype(jnp.float32)
    mean = jnp.mean(x, axis=-1, keepdims=True)
    var = jnp.mean(x * x, axis=-1, keepdims=True) - mean * mean
    xn = (x - mean) * jax.lax.rsqrt(var + EPS)
    y = jnp.dot(xn, w_ref[...], preferred_element_type=jnp.float32) + b_ref[...]

    wgt = wgt_ref[...]                                # (TM, K)
    interp = g_ref[0] * wgt[:, 0:1]                   # (TM, C_OUT)
    for j in range(1, wgt.shape[1]):
        interp = interp + g_ref[j] * wgt[:, j:j + 1]

    o_ref[...] = (y + interp).astype(o_ref.dtype)


# ------------------------------ wrappers -------------------------------------
def ln_linear_pallas(x, w_folded, b_folded, tm=256):
    """x: (n, c_in) -> (n, c_out) = Linear(LayerNorm(x)) with folded params."""
    n, c_in = x.shape
    c_out = w_folded.shape[1]
    tm = min(tm, _round_up(n, 8))
    n_pad = _round_up(n, tm)
    if n_pad != n:
        # TODO(synk): emit already tile-aligned feats upstream to avoid this copy.
        x = jnp.pad(x, ((0, n_pad - n), (0, 0)))
    out = pl.pallas_call(
        _ln_linear_kernel,
        out_shape=jax.ShapeDtypeStruct((n_pad, c_out), jnp.float32),
        grid_spec=pltpu.PrefetchScalarGridSpec(
            num_scalar_prefetch=0,
            grid=(n_pad // tm,),
            in_specs=[
                pl.BlockSpec((tm, c_in), lambda i: (i, 0)),
                pl.BlockSpec((c_in, c_out), lambda i: (0, 0)),
                pl.BlockSpec((1, c_out), lambda i: (0, 0)),
            ],
            out_specs=pl.BlockSpec((tm, c_out), lambda i: (i, 0)),
        ),
        compiler_params=pltpu.CompilerParams(dimension_semantics=("parallel",)),
    )(x, w_folded, b_folded.reshape(1, c_out))
    return out[:n]


def upsample_fused_pallas(support_feats, gathered, weights, w1_folded, b1_folded,
                          tm=256):
    """support_feats (N, c_out) bf16, gathered (K, N, c_out) f32, weights (N, K) f32."""
    N, c_out = support_feats.shape
    k = gathered.shape[0]
    tm = min(tm, _round_up(N, 8))
    n_pad = _round_up(N, tm)
    if n_pad != N:
        # TODO(synk): build the gather/weight/support arrays already tile-aligned
        # upstream instead of re-copying the whole tensors here.
        support_feats = jnp.pad(support_feats, ((0, n_pad - N), (0, 0)))
        gathered = jnp.pad(gathered, ((0, 0), (0, n_pad - N), (0, 0)))
        weights = jnp.pad(weights, ((0, n_pad - N), (0, 0)))
    out = pl.pallas_call(
        _upsample_fused_kernel,
        out_shape=jax.ShapeDtypeStruct((n_pad, c_out), jnp.float32),
        grid_spec=pltpu.PrefetchScalarGridSpec(
            num_scalar_prefetch=0,
            grid=(n_pad // tm,),
            in_specs=[
                pl.BlockSpec((tm, c_out), lambda i: (i, 0)),        # support feats
                pl.BlockSpec((k, tm, c_out), lambda i: (0, i, 0)),  # gathered NNs
                pl.BlockSpec((tm, k), lambda i: (i, 0)),            # interp weights
                pl.BlockSpec((c_out, c_out), lambda i: (0, 0)),     # folded W1
                pl.BlockSpec((1, c_out), lambda i: (0, 0)),         # folded b1
            ],
            out_specs=pl.BlockSpec((tm, c_out), lambda i: (i, 0)),
        ),
        compiler_params=pltpu.CompilerParams(dimension_semantics=("parallel",)),
    )(support_feats, gathered, weights, w1_folded, b1_folded.reshape(1, c_out))
    return out[:N]


# -------------------------- host-side glue (numpy) ---------------------------
# TODO(synk): pointops.knnquery is a data-dependent per-segment kNN search
# (CUDA kernel in the original); done host-side in numpy here.
def _knn_interp_indices_weights(coarse_xyz, fine_xyz, offset, support_offset,
                                k=K_INTERP):
    N = fine_xyz.shape[0]
    idx = np.zeros((N, k), dtype=np.int32)
    wgt = np.zeros((N, k), dtype=np.float32)
    start, sstart = 0, 0
    for b in range(len(offset)):
        end, send = int(offset[b]), int(support_offset[b])
        cx = coarse_xyz[start:end]
        fx = fine_xyz[sstart:send]
        d2 = np.sum((fx[:, None, :] - cx[None, :, :]) ** 2, axis=-1)
        nn = np.argsort(d2, axis=1, kind="stable")[:, :k]
        d = np.sqrt(np.take_along_axis(d2, nn, axis=1))
        recip = 1.0 / (d + 1e-8)
        wgt[sstart:send] = (recip / recip.sum(axis=1, keepdims=True)).astype(np.float32)
        idx[sstart:send] = nn + start
        start, sstart = end, send
    return idx, wgt


def upsample_forward(feats, xyz, support_xyz, offset, support_offset,
                     support_feats, params, tm=256):
    # Fold LN affine + Linear bias into the matmul weights (tiny, host-side).
    w1f = (params["ln1_g"][:, None] * params["w1"].T).astype(jnp.float32)
    b1f = (params["ln1_b"] @ params["w1"].T + params["b1"]).astype(jnp.float32)
    w2f = (params["ln2_g"][:, None] * params["w2"].T).astype(jnp.float32)
    b2f = (params["ln2_b"] @ params["w2"].T + params["b2"]).astype(jnp.float32)

    idx, wgt = _knn_interp_indices_weights(
        np.asarray(xyz), np.asarray(support_xyz),
        np.asarray(offset), np.asarray(support_offset))

    feats2 = ln_linear_pallas(feats, w2f, b2f, tm=tm)              # (n, c_out) f32
    # Neighbor axis leading -> (K, N, c_out): sublane/lane dense blocks.
    gathered = jnp.take(feats2, jnp.asarray(idx.T), axis=0)        # XLA gather
    out = upsample_fused_pallas(support_feats, gathered, jnp.asarray(wgt),
                                w1f, b1f, tm=tm)
    return out, support_xyz, support_offset


# --------------------------------- main --------------------------------------
if __name__ == "__main__":
    C_IN, C_OUT = 64, 128
    offset_np = np.array([64, 128], dtype=np.int32)            # coarse level (n=128)
    support_offset_np = np.array([256, 512], dtype=np.int32)   # fine level (N=512)
    n, N = int(offset_np[-1]), int(support_offset_np[-1])

    key = jax.random.PRNGKey(0)
    ks = jax.random.split(key, 12)
    xyz = jax.random.uniform(ks[0], (n, 3), jnp.float32)
    support_xyz = jax.random.uniform(ks[1], (N, 3), jnp.float32)
    feats = jax.random.normal(ks[2], (n, C_IN), jnp.float32)
    # Fine-level features travel over HBM as bf16 (cast to f32 inside the kernel).
    support_feats = jax.random.normal(ks[3], (N, C_OUT), jnp.float32).astype(jnp.bfloat16)

    bound1 = 1.0 / np.sqrt(C_OUT)
    bound2 = 1.0 / np.sqrt(C_IN)
    params = dict(
        ln1_g=1.0 + 0.1 * jax.random.normal(ks[4], (C_OUT,), jnp.float32),
        ln1_b=0.05 * jax.random.normal(ks[5], (C_OUT,), jnp.float32),
        w1=jax.random.uniform(ks[6], (C_OUT, C_OUT), jnp.float32, -bound1, bound1),
        b1=jax.random.uniform(ks[7], (C_OUT,), jnp.float32, -bound1, bound1),
        ln2_g=1.0 + 0.1 * jax.random.normal(ks[8], (C_IN,), jnp.float32),
        ln2_b=0.05 * jax.random.normal(ks[9], (C_IN,), jnp.float32),
        w2=jax.random.uniform(ks[10], (C_OUT, C_IN), jnp.float32, -bound2, bound2),
        b2=jax.random.uniform(ks[11], (C_OUT,), jnp.float32, -bound2, bound2),
    )

    # tm=256 -> 2 grid steps over the fine points (keeps both v7x TCs busy).
    out, out_xyz, out_off = upsample_forward(
        feats, xyz, support_xyz, offset_np, support_offset_np,
        support_feats, params, tm=256)
    out = jax.block_until_ready(out)

    # ------------------------- plain-JAX reference ---------------------------
    def layer_norm(x, g, b):
        mu = jnp.mean(x, -1, keepdims=True)
        var = jnp.mean((x - mu) ** 2, -1, keepdims=True)
        return (x - mu) / jnp.sqrt(var + EPS) * g + b

    feats2_ref = layer_norm(feats, params["ln2_g"], params["ln2_b"]) @ params["w2"].T + params["b2"]
    idx_ref, wgt_ref = _knn_interp_indices_weights(
        np.asarray(xyz), np.asarray(support_xyz), offset_np, support_offset_np)
    wgt_j = jnp.asarray(wgt_ref)
    interp_ref = sum(wgt_j[:, j:j + 1] * feats2_ref[idx_ref[:, j]] for j in range(K_INTERP))
    sf32 = support_feats.astype(jnp.float32)
    lin1_ref = layer_norm(sf32, params["ln1_g"], params["ln1_b"]) @ params["w1"].T + params["b1"]
    ref = lin1_ref + interp_ref

    assert out.shape == (N, C_OUT)
    np.testing.assert_allclose(np.asarray(out), np.asarray(ref), rtol=1e-3, atol=1e-3)
    print("KERNEL_OK")
</pallas_src>

<mosaic_0001>
module attributes {stable_mosaic.version = 11 : i64} {
  func.func @_ln_linear_kernel(%arg0: i32, %arg1: memref<128x64xf32, #tpu.memory_space<vmem>>, %arg2: memref<64x128xf32, #tpu.memory_space<vmem>>, %arg3: memref<1x128xf32, #tpu.memory_space<vmem>>, %arg4: memref<128x128xf32, #tpu.memory_space<vmem>>) attributes {dimension_semantics = [#tpu.dimension_semantics<parallel>], iteration_bounds = array<i64: 1>, scalar_prefetch = 0 : i64, scratch_operands = 0 : i64, tpu.core_type = #tpu.core_type<tc>, window_params = [{transform_indices = @transform_0, window_bounds = array<i64: 128, 64>}, {pipeline_mode = #tpu.pipeline_mode<synchronous>, transform_indices = @transform_1, window_bounds = array<i64: 64, 128>}, {pipeline_mode = #tpu.pipeline_mode<synchronous>, transform_indices = @transform_2, window_bounds = array<i64: 1, 128>}, {transform_indices = @transform_3, window_bounds = array<i64: 128, 128>}]} {
    %c0 = arith.constant 0 : index
    %c0_0 = arith.constant 0 : index
    %0 = vector.load %arg1[%c0, %c0_0] : memref<128x64xf32, #tpu.memory_space<vmem>>, vector<128x64xf32>
    %cst = arith.constant dense<0.000000e+00> : vector<128xf32>
    %1 = vector.multi_reduction <add>, %0, %cst [1] : vector<128x64xf32> to vector<128xf32>
    %2 = vector.shape_cast %1 : vector<128xf32> to vector<128x1xf32>
    %cst_1 = arith.constant 6.400000e+01 : f32
    %3 = vector.broadcast %cst_1 : f32 to vector<128x1xf32>
    %4 = arith.divf %2, %3 : vector<128x1xf32>
    %5 = arith.mulf %0, %0 : vector<128x64xf32>
    %cst_2 = arith.constant dense<0.000000e+00> : vector<128xf32>
    %6 = vector.multi_reduction <add>, %5, %cst_2 [1] : vector<128x64xf32> to vector<128xf32>
    %7 = vector.shape_cast %6 : vector<128xf32> to vector<128x1xf32>
    %cst_3 = arith.constant 6.400000e+01 : f32
    %8 = vector.broadcast %cst_3 : f32 to vector<128x1xf32>
    %9 = arith.divf %7, %8 : vector<128x1xf32>
    %10 = arith.mulf %4, %4 : vector<128x1xf32>
    %11 = arith.subf %9, %10 : vector<128x1xf32>
    %12 = vector.broadcast %4 : vector<128x1xf32> to vector<128x64xf32>
    %13 = arith.subf %0, %12 : vector<128x64xf32>
    %cst_4 = arith.constant 9.99999974E-6 : f32
    %14 = vector.broadcast %cst_4 : f32 to vector<128x1xf32>
    %15 = arith.addf %11, %14 : vector<128x1xf32>
    %16 = math.rsqrt %15 : vector<128x1xf32>
    %17 = vector.broadcast %16 : vector<128x1xf32> to vector<128x64xf32>
    %18 = arith.mulf %13, %17 : vector<128x64xf32>
    %c0_5 = arith.constant 0 : index
    %c0_6 = arith.constant 0 : index
    %19 = vector.load %arg2[%c0_5, %c0_6] : memref<64x128xf32, #tpu.memory_space<vmem>>, vector<64x128xf32>
    %cst_7 = arith.constant dense<0.000000e+00> : vector<128x128xf32>
    %20 = tpu.matmul %18, %19, %cst_7 {dimension_numbers = #tpu.dot_dimension_numbers<[1], [0], [0], [1], [0, 0, 1, 1], [], []>} : vector<128x64xf32>, vector<64x128xf32>, vector<128x128xf32> -> vector<128x128xf32>
    %c0_8 = arith.constant 0 : index
    %c0_9 = arith.constant 0 : index
    %21 = vector.load %arg3[%c0_8, %c0_9] : memref<1x128xf32, #tpu.memory_space<vmem>>, vector<1x128xf32>
    %22 = vector.broadcast %21 : vector<1x128xf32> to vector<128x128xf32>
    %23 = arith.addf %20, %22 : vector<128x128xf32>
    %c0_10 = arith.constant 0 : index
    %c0_11 = arith.constant 0 : index
    %24 = vector.load %arg4[%c0_10, %c0_11] : memref<128x128xf32, #tpu.memory_space<vmem>>, vector<128x128xf32>
    tpu.vector_store %arg4[%c0_10, %c0_11], %23 {strides = array<i32>} : memref<128x128xf32, #tpu.memory_space<vmem>>, vector<128x128xf32>,
    return
  }
  func.func @transform_0(%arg0: i32) -> (i32, i32) {
    %c0_i32 = arith.constant 0 : i32
    %c0_i32_0 = arith.constant 0 : i32
    return %arg0, %c0_i32 : i32, i32
  }
  func.func @transform_1(%arg0: i32) -> (i32, i32) {
    %c0_i32 = arith.constant 0 : i32
    %c0_i32_0 = arith.constant 0 : i32
    %c0_i32_1 = arith.constant 0 : i32
    return %c0_i32, %c0_i32_0 : i32, i32
  }
  func.func @transform_2(%arg0: i32) -> (i32, i32) {
    %c0_i32 = arith.constant 0 : i32
    %c0_i32_0 = arith.constant 0 : i32
    %c0_i32_1 = arith.constant 0 : i32
    return %c0_i32, %c0_i32_0 : i32, i32
  }
  func.func @transform_3(%arg0: i32) -> (i32, i32) {
    %c0_i32 = arith.constant 0 : i32
    %c0_i32_0 = arith.constant 0 : i32
    return %arg0, %c0_i32 : i32, i32
  }
}

</mosaic_0001>

<bundles_post_ra>
// kernel: tpu_custom_call.1
= control target key start
LH: loop header
LB: loop body
LE: loop exit
PB: predicated region body
PF: predicated region fallthrough
CT: control target
= control target key end

     0   :  { %vm31_vm0 = vcmask 523264   ;;  %s976_s0 = inlined_call_operand.vmem [shape: f32[128,64], index: 0, kind: input, shape index: {}]   ;;  %s977_s1 = inlined_call_operand.vmem [shape: f32[64,128], index: 1, kind: input, shape index: {}]   ;;  %s978_s2 = inlined_call_operand.vmem [shape: f32[1,128], index: 2, kind: input, shape index: {}]   ;;  %s979_s3 = inlined_call_operand.hbm [shape: f32[128,128], index: 3, kind: output, shape index: {}]  }
   0x1   :  { %v703_v0 = vld [vmem:[%s976_s0 + $0x8] sm:$0xff]  ;;  %v708_v1 = vld [vmem:[%s976_s0] sm:$0xff] }
   0x2   :  { %v713_v2 = vld [vmem:[%s976_s0 + $0x48] sm:$0xff]  ;;  %v35_v3 = vsel %vm31_vm0, %v703_v0, 0.0  ;;  %v32_v4 = vsel %vm31_vm0, %v708_v1, 0.0  ;;  %v722_v5 = vld [vmem:[%s976_s0 + $0x40] sm:$0xff]  ;;  %v97_v9 = vmul.f32 %v708_v1, %v708_v1 }
   0x3   :  { %36 = vadd.xlane.f32.xlu1 %v35_v3  ;;  %33 = vadd.xlane.f32.xlu0 %v32_v4  ;;  %v59_v6 = vsel %vm31_vm0, %v713_v2, 0.0  ;;  %v56_v7 = vsel %vm31_vm0, %v722_v5, 0.0  ;;  %v105_v8 = vmul.f32 %v722_v5, %v722_v5 }
   0x7   :  { %60 = vadd.xlane.f32.xlu1 %v59_v6  ;;  %57 = vadd.xlane.f32.xlu0 %v56_v7 }
   0x8   :  { %8 = vsyncpa [#allocation3], 0  ;;  %v137_v10 = vsel %vm31_vm0, %v105_v8, 0.0  ;;  %v113_v11 = vsel %vm31_vm0, %v97_v9, 0.0  ;;  %v106_v12 = vmul.f32 %v713_v2, %v713_v2  ;;  %v98_v13 = vmul.f32 %v703_v0, %v703_v0  ;;  %v743_v16 = vld [vmem:[%s976_s0 + $0x50] sm:$0xff]  ;;  %v757_v20 = vld [vmem:[%s976_s0 + $0x58] sm:$0xff] }
   0x9   :  { %v748_v17 = vld [vmem:[%s976_s0 + $0x10] sm:$0xff]  ;;  %v62_v18 = vsel %vm31_vm0, %v743_v16, 0.0  ;;  %v762_v21 = vld [vmem:[%s976_s0 + $0x18] sm:$0xff]  ;;  %v65_v22 = vsel %vm31_vm0, %v757_v20, 0.0  ;;  %v107_v24 = vmul.f32 %v743_v16, %v743_v16  ;;  %v108_v28 = vmul.f32 %v757_v20, %v757_v20  ;;  %v783_v32 = vld [vmem:[%s976_s0 + $0x60] sm:$0xff] }
   0xa   :  { %v140_v14 = vsel %vm31_vm0, %v106_v12, 0.0  ;;  %v116_v15 = vsel %vm31_vm0, %v98_v13, 0.0  ;;  %v38_v19 = vsel %vm31_vm0, %v748_v17, 0.0  ;;  %v41_v23 = vsel %vm31_vm0, %v762_v21, 0.0  ;;  %v788_v33 = vld [vmem:[%s976_s0 + $0x20] sm:$0xff]  ;;  %v274_v35 = vld [vmem:[%s977_s1 + $0x8] sm:$0xff] }
   0xb   :  { %138 = vadd.xlane.f32.xlu1 %v137_v10  ;;  %114 = vadd.xlane.f32.xlu0 %v113_v11  ;;  %v99_v25 = vmul.f32 %v748_v17, %v748_v17  ;;  %v143_v26 = vsel %vm31_vm0, %v107_v24, 0.0  ;;  %v100_v29 = vmul.f32 %v762_v21, %v762_v21  ;;  %v146_v30 = vsel %vm31_vm0, %v108_v28, 0.0  ;;  %v273_v34 = vld [vmem:[%s977_s1] sm:$0xff]  ;;  %v803_v39 = vld [vmem:[%s976_s0 + $0x68] sm:$0xff]  ;;  %v275_v41 = vld [vmem:[%s977_s1 + $0x10] sm:$0xff] }
   0xc   :  { %v594_v36 = vpack.c.bf16 %v274_v35, %v273_v34  ;;  %v68_v37 = vsel %vm31_vm0, %v783_v32, 0.0  ;;  %v44_v38 = vsel %vm31_vm0, %v788_v33, 0.0  ;;  %v808_v40 = vld [vmem:[%s976_s0 + $0x28] sm:$0xff]  ;;  %v276_v42 = vld [vmem:[%s977_s1 + $0x18] sm:$0xff]  ;;  %v71_v44 = vsel %vm31_vm0, %v803_v39, 0.0  ;;  %v277_v48 = vld [vmem:[%s977_s1 + $0x20] sm:$0xff] }
   0xd   :  { %v119_v27 = vsel %vm31_vm0, %v99_v25, 0.0  ;;  %v122_v31 = vsel %vm31_vm0, %v100_v29, 0.0  ;;  %v598_v43 = vpack.c.bf16 %v276_v42, %v275_v41  ;;  %v47_v45 = vsel %vm31_vm0, %v808_v40, 0.0  ;;  %v278_v49 = vld [vmem:[%s977_s1 + $0x28] sm:$0xff]  ;;  %v279_v55 = vld [vmem:[%s977_s1 + $0x30] sm:$0xff]  ;;  %v280_v56 = vld [vmem:[%s977_s1 + $0x38] sm:$0xff] }
   0xe   :  { %595 = vmatprep.subr.bf16.mxu0 %v594_v36  ;;  %610 = vmatprep.subr.bf16.mxu1 %v594_v36  ;;  %v109_v46 = vmul.f32 %v783_v32, %v783_v32  ;;  %v101_v47 = vmul.f32 %v788_v33, %v788_v33  ;;  %v602_v50 = vpack.c.bf16 %v278_v49, %v277_v48  ;;  %v847_v60 = vld [vmem:[%s976_s0 + $0x70] sm:$0xff]  ;;  %v861_v3 = vld [vmem:[%s976_s0 + $0x78] sm:$0xff] }
   0xf   :  { %141 = vadd.xlane.f32.xlu1 %v140_v14  ;;  %117 = vadd.xlane.f32.xlu0 %v116_v15  ;;  %v110_v53 = vmul.f32 %v803_v39, %v803_v39  ;;  %v102_v54 = vmul.f32 %v808_v40, %v808_v40  ;;  %v606_v57 = vpack.c.bf16 %v280_v56, %v279_v55  ;;  %v852_v61 = vld [vmem:[%s976_s0 + $0x30] sm:$0xff]  ;;  %v74_v62 = vsel %vm31_vm0, %v847_v60, 0.0  ;;  %v866_v4 = vld [vmem:[%s976_s0 + $0x38] sm:$0xff] }
  0x10   :  { %597 = vmatpush3.bf16.msra.mxu0 %v594_v36  ;;  %614 = vmatpush3.bf16.msra.mxu1 %v594_v36  ;;  %v149_v51 = vsel %vm31_vm0, %v109_v46, 0.0  ;;  %v125_v52 = vsel %vm31_vm0, %v101_v47, 0.0  ;;  %v50_v63 = vsel %vm31_vm0, %v852_v61, 0.0  ;;  %v77_v6 = vsel %vm31_vm0, %v861_v3, 0.0 }
  0x11   :  { %599 = vmatprep.subr.bf16.mxu0 %v598_v43  ;;  %611 = vmatprep.subr.bf16.mxu1 %v598_v43  ;;  %v152_v58 = vsel %vm31_vm0, %v110_v53, 0.0  ;;  %v128_v59 = vsel %vm31_vm0, %v102_v54, 0.0  ;;  %v53_v7 = vsel %vm31_vm0, %v866_v4, 0.0  ;;  %v111_v8 = vmul.f32 %v847_v60, %v847_v60 }
  0x12   :  { %v103_v9 = vmul.f32 %v852_v61, %v852_v61  ;;  %v112_v12 = vmul.f32 %v861_v3, %v861_v3  ;;  %v104_v13 = vmul.f32 %v866_v4, %v866_v4 }
  0x13   :  { %63 = vadd.xlane.f32.xlu1 %v62_v18  ;;  %39 = vadd.xlane.f32.xlu0 %v38_v19  ;;  %v155_v10 = vsel %vm31_vm0, %v111_v8, 0.0 }
  0x14   :  { %601 = vmatpush3.bf16.msra.mxu0 %v598_v43  ;;  %615 = vmatpush3.bf16.msra.mxu1 %v598_v43  ;;  %v131_v11 = vsel %vm31_vm0, %v103_v9, 0.0  ;;  %v158_v14 = vsel %vm31_vm0, %v112_v12, 0.0  ;;  %v134_v15 = vsel %vm31_vm0, %v104_v13, 0.0 }
  0x15   :  { %603 = vmatprep.subr.bf16.mxu0 %v602_v50  ;;  %612 = vmatprep.subr.bf16.mxu1 %v602_v50 }
  0x17   :  { %66 = vadd.xlane.f32.xlu1 %v65_v22  ;;  %42 = vadd.xlane.f32.xlu0 %v41_v23 }
  0x18   :  { %605 = vmatpush3.bf16.msra.mxu0 %v602_v50  ;;  %616 = vmatpush3.bf16.msra.mxu1 %v602_v50 }
  0x19   :  { %607 = vmatprep.subr.bf16.mxu0 %v606_v57  ;;  %613 = vmatprep.subr.bf16.mxu1 %v606_v57 }
  0x1b   :  { %144 = vadd.xlane.f32.xlu1 %v143_v26  ;;  %120 = vadd.xlane.f32.xlu0 %v119_v27 }
  0x1c   :  { %609 = vmatpush3.bf16.msra.mxu0 %v606_v57  ;;  %617 = vmatpush3.bf16.msra.mxu1 %v606_v57 }
  0x1f   :  { %147 = vadd.xlane.f32.xlu1 %v146_v30  ;;  %123 = vadd.xlane.f32.xlu0 %v122_v31 }
  0x23   :  { %69 = vadd.xlane.f32.xlu1 %v68_v37  ;;  %45 = vadd.xlane.f32.xlu0 %v44_v38 }
  0x27   :  { %72 = vadd.xlane.f32.xlu1 %v71_v44  ;;  %48 = vadd.xlane.f32.xlu0 %v47_v45 }
  0x2b   :  { %150 = vadd.xlane.f32.xlu1 %v149_v51  ;;  %126 = vadd.xlane.f32.xlu0 %v125_v52 }
  0x2f   :  { %153 = vadd.xlane.f32.xlu1 %v152_v58  ;;  %129 = vadd.xlane.f32.xlu0 %v128_v59 }
  0x33   :  { %75 = vadd.xlane.f32.xlu1 %v74_v62  ;;  %51 = vadd.xlane.f32.xlu0 %v50_v63 }
  0x37   :  { %78 = vadd.xlane.f32.xlu1 %v77_v6  ;;  %54 = vadd.xlane.f32.xlu0 %v53_v7 }
  0x3b   :  { %156 = vadd.xlane.f32.xlu1 %v155_v10  ;;  %132 = vadd.xlane.f32.xlu0 %v131_v11 }
  0x3f   :  { %159 = vadd.xlane.f32.xlu1 %v158_v14  ;;  %135 = vadd.xlane.f32.xlu0 %v134_v15 }
  0x90   :  { %v37_v18 = vpop.xlane.xlu1 %36  ;;  %v34_v19 = vpop.xlane.xlu0 %33 }
  0x91   :  { %v81_v24 = vmul.f32 0.015625, %v34_v19  ;;  %v884_v26 = vmul.f32 0.015625, %v37_v18 }
  0x93   :  { %v177_v30 = vmul.f32 %v81_v24, %v81_v24  ;;  %v178_v38 = vmul.f32 %v884_v26, %v884_v26  ;;  %v209_v58 = vsub.f32 %v708_v1, %v81_v24  ;;  %v210_v18 = vsub.f32 %v703_v0, %v884_v26 }
  0x94   :  { %v61_v22 = vpop.xlane.xlu1 %60  ;;  %v58_v23 = vpop.xlane.xlu0 %57 }
  0x95   :  { %v89_v25 = vmul.f32 0.015625, %v58_v23  ;;  %v90_v27 = vmul.f32 0.015625, %v61_v22 }
  0x97   :  { %v185_v31 = vmul.f32 %v89_v25, %v89_v25  ;;  %v186_v41 = vmul.f32 %v90_v27, %v90_v27  ;;  %v217_v59 = vsub.f32 %v722_v5, %v89_v25  ;;  %v218_v19 = vsub.f32 %v713_v2, %v90_v27 }
  0x98   :  { %v139_v28 = vpop.xlane.xlu1 %138  ;;  %v115_v29 = vpop.xlane.xlu0 %114 }
  0x99   :  { %v169_v34 = vmul.f32 0.015625, %v139_v28  ;;  %v161_v35 = vmul.f32 0.015625, %v115_v29 }
  0x9b   :  { %v201_v36 = vsub.f32 %v169_v34, %v185_v31  ;;  %v193_v37 = vsub.f32 %v161_v35, %v177_v30 }
  0x9c   :  { %v142_v42 = vpop.xlane.xlu1 %141  ;;  %v118_v43 = vpop.xlane.xlu0 %117 }
  0x9d   :  { %v233_v44 = vadd.f32 1e-05, %v201_v36  ;;  %v225_v45 = vadd.f32 1e-05, %v193_v37  ;;  %v170_v46 = vmul.f32 0.015625, %v142_v42  ;;  %v162_v47 = vmul.f32 0.015625, %v118_v43 }
  0x9f   :  { %621 = vrsqrt.f32 %v233_v44  ;;  %v202_v48 = vsub.f32 %v170_v46, %v186_v41  ;;  %v194_v49 = vsub.f32 %v162_v47, %v178_v38 }
  0xa0   :  { %623 = vrsqrt.f32 %v225_v45  ;;  %v64_v50 = vpop.xlane.xlu1 %63  ;;  %v40_v51 = vpop.xlane.xlu0 %39 }
  0xa1   :  { %v234_v52 = vadd.f32 1e-05, %v202_v48  ;;  %v226_v53 = vadd.f32 1e-05, %v194_v49  ;;  %v888_v56 = vmul.f32 0.015625, %v64_v50  ;;  %v890_v57 = vmul.f32 0.015625, %v40_v51 }
  0xa3   :  { %625 = vrsqrt.f32 %v234_v52  ;;  %v187_v9 = vmul.f32 %v888_v56, %v888_v56  ;;  %v179_v10 = vmul.f32 %v890_v57, %v890_v57  ;;  %v219_v46 = vsub.f32 %v743_v16, %v888_v56 }
  0xa4   :  { %627 = vrsqrt.f32 %v226_v53  ;;  %v67_v54 = vpop.xlane.xlu1 %66  ;;  %v43_v55 = vpop.xlane.xlu0 %42  ;;  %v211_v47 = vsub.f32 %v748_v17, %v890_v57 }
  0xa5   :  { %v894_v62 = vmul.f32 0.015625, %v67_v54  ;;  %v896_v63 = vmul.f32 0.015625, %v43_v55 }
  0xa7   :  { %v188_v22 = vmul.f32 %v894_v62, %v894_v62  ;;  %v180_v23 = vmul.f32 %v896_v63, %v896_v63  ;;  %v220_v57 = vsub.f32 %v757_v20, %v894_v62 }
  0xa8   :  { %v145_v6 = vpop.xlane.xlu1 %144  ;;  %v121_v7 = vpop.xlane.xlu0 %120 }
  0xa9   :  { %v622_v8 = vpop.eup %621  ;;  %v171_v11 = vmul.f32 0.015625, %v145_v6  ;;  %v163_v12 = vmul.f32 0.015625, %v121_v7  ;;  %v212_v7 = vsub.f32 %v762_v21, %v896_v63 }
  0xaa   :  { %v624_v13 = vpop.eup %623  ;;  %v265_v14 = vmul.f32 %v622_v8, %v217_v59 }
  0xab   :  { %v203_v1 = vsub.f32 %v171_v11, %v187_v9  ;;  %v195_v15 = vsub.f32 %v163_v12, %v179_v10  ;;  %v257_v5 = vmul.f32 %v624_v13, %v209_v58 }
  0xac   :  { %v148_v24 = vpop.xlane.xlu1 %147  ;;  %582 = vmatprep.mubr.msk.f32.mxu1 %vm31_vm0, %v265_v14  ;;  %v124_v25 = vpop.xlane.xlu0 %123 }
  0xad   :  { %v626_v28 = vpop.eup %625  ;;  %v235_v29 = vadd.f32 1e-05, %v203_v1  ;;  %v227_v30 = vadd.f32 1e-05, %v195_v15  ;;  %v172_v31 = vmul.f32 0.015625, %v148_v24  ;;  %570 = vmatprep.mubr.msk.f32.mxu0 %vm31_vm0, %v257_v5  ;;  %v164_v34 = vmul.f32 0.015625, %v124_v25 }
  0xae   :  { %v628_v0 = vpop.eup %627  ;;  %v266_v26 = vmul.f32 %v626_v28, %v218_v19 }
  0xaf   :  { %629 = vrsqrt.f32 %v235_v29  ;;  %v204_v2 = vsub.f32 %v172_v31, %v188_v22  ;;  %v196_v27 = vsub.f32 %v164_v34, %v180_v23  ;;  %v258_v35 = vmul.f32 %v628_v0, %v210_v18 }
  0xb0   :  { %631 = vrsqrt.f32 %v227_v30  ;;  %v70_v36 = vpop.xlane.xlu1 %69  ;;  %583 = vmatmul.mubr.msk.f32.vlgmr.msra.gmra.mrb[0].mxu1 %vm31_vm0, %v266_v26  ;;  %v46_v37 = vpop.xlane.xlu0 %45 }
  0xb1   :  { %v236_v38 = vadd.f32 1e-05, %v204_v2  ;;  %v228_v41 = vadd.f32 1e-05, %v196_v27  ;;  %571 = vmatmul.mubr.msk.f32.vlgmr.msra.gmra.mrb[0].mxu0 %vm31_vm0, %v258_v35  ;;  %v913_v44 = vmul.f32 0.015625, %v70_v36  ;;  %v915_v45 = vmul.f32 0.015625, %v46_v37 }
  0xb3   :  { %633 = vrsqrt.f32 %v236_v38  ;;  %v189_v53 = vmul.f32 %v913_v44, %v913_v44  ;;  %v181_v54 = vmul.f32 %v915_v45, %v915_v45  ;;  %v221_v30 = vsub.f32 %v783_v32, %v913_v44 }
  0xb4   :  { %635 = vrsqrt.f32 %v228_v41  ;;  %v73_v42 = vpop.xlane.xlu1 %72  ;;  %v49_v43 = vpop.xlane.xlu0 %48  ;;  %v213_v31 = vsub.f32 %v788_v33, %v915_v45 }
  0xb5   :  { %v921_v48 = vmul.f32 0.015625, %v73_v42  ;;  %v923_v49 = vmul.f32 0.015625, %v49_v43 }
  0xb7   :  { %v190_v8 = vmul.f32 %v921_v48, %v921_v48  ;;  %v182_v9 = vmul.f32 %v923_v49, %v923_v49  ;;  %v222_v32 = vsub.f32 %v803_v39, %v921_v48  ;;  %v214_v33 = vsub.f32 %v808_v40, %v923_v49 }
  0xb8   :  { %v151_v50 = vpop.xlane.xlu1 %150  ;;  %v127_v51 = vpop.xlane.xlu0 %126 }
  0xb9   :  { %v630_v52 = vpop.eup %629  ;;  %v173_v55 = vmul.f32 0.015625, %v151_v50  ;;  %v165_v58 = vmul.f32 0.015625, %v127_v51 }
  0xba   :  { %v632_v59 = vpop.eup %631  ;;  %v267_v16 = vmul.f32 %v630_v52, %v219_v46 }
  0xbb   :  { %v205_v56 = vsub.f32 %v173_v55, %v189_v53  ;;  %v197_v6 = vsub.f32 %v165_v58, %v181_v54  ;;  %v259_v17 = vmul.f32 %v632_v59, %v211_v47 }
  0xbc   :  { %v154_v10 = vpop.xlane.xlu1 %153  ;;  %585 = vmatprep.mubr.msk.f32.mxu1 %vm31_vm0, %v267_v16  ;;  %v130_v11 = vpop.xlane.xlu0 %129 }
  0xbd   :  { %v634_v12 = vpop.eup %633  ;;  %v237_v13 = vadd.f32 1e-05, %v205_v56  ;;  %v229_v14 = vadd.f32 1e-05, %v197_v6  ;;  %v174_v1 = vmul.f32 0.015625, %v154_v10  ;;  %573 = vmatprep.mubr.msk.f32.mxu0 %vm31_vm0, %v259_v17  ;;  %v166_v20 = vmul.f32 0.015625, %v130_v11 }
  0xbe   :  { %v636_v62 = vpop.eup %635  ;;  %v268_v15 = vmul.f32 %v634_v12, %v220_v57 }
  0xbf   :  { %637 = vrsqrt.f32 %v237_v13  ;;  %v206_v21 = vsub.f32 %v174_v1, %v190_v8  ;;  %v198_v63 = vsub.f32 %v166_v20, %v182_v9  ;;  %v260_v5 = vmul.f32 %v636_v62, %v212_v7 }
  0xc0   :  { %639 = vrsqrt.f32 %v229_v14  ;;  %v76_v18 = vpop.xlane.xlu1 %75  ;;  %586 = vmatmul.mubr.msk.f32.gmra.mrb[2].mxu1 %vm31_vm0, %v268_v15  ;;  %v52_v19 = vpop.xlane.xlu0 %51 }
  0xc1   :  { %v238_v22 = vadd.f32 1e-05, %v206_v21  ;;  %v230_v23 = vadd.f32 1e-05, %v198_v63  ;;  %574 = vmatmul.mubr.msk.f32.gmra.mrb[2].mxu0 %vm31_vm0, %v260_v5  ;;  %v95_v28 = vmul.f32 0.015625, %v76_v18  ;;  %v87_v29 = vmul.f32 0.015625, %v52_v19 }
  0xc3   :  { %641 = vrsqrt.f32 %v238_v22  ;;  %v191_v35 = vmul.f32 %v95_v28, %v95_v28  ;;  %v183_v36 = vmul.f32 %v87_v29, %v87_v29  ;;  %v223_v6 = vsub.f32 %v847_v60, %v95_v28  ;;  %v513_v60 = vld [vmem:[%s978_s2] ss:$0 sm:$0xff]  ;;  %s677_s2 = smov [#allocation2]  }
  0xc4   :  { %643 = vrsqrt.f32 %v230_v23  ;;  %v79_v24 = vpop.xlane.xlu1 %78  ;;  %v55_v25 = vpop.xlane.xlu0 %54  ;;  %v215_v57 = vsub.f32 %v852_v61, %v87_v29  ;;  %s502_s6 = sshll.u32 %s677_s2, 4  ;;  %s503_s6 = int_to_ptr.vmem [resolvable:$true] %s502_s6 }
  0xc5   :  { %v96_v34 = vmul.f32 0.015625, %v79_v24  ;;  %v88_v0 = vmul.f32 0.015625, %v55_v25  ;;  %s653_s7 = scalar_lea.vmem %s503_s6, 2048  ;;  %p658_p1 = scmp.lt.s32.totalorder %s503_s6, %s503_s6 }
  0xc6   :  { %p654_p0 = scmp.ne.s32.totalorder %s503_s6, %s653_s7  ;;  %p659_p2 = scmp.lt.s32.totalorder %s653_s7, %s653_s7 }
  0xc7   :  { %v192_v44 = vmul.f32 %v96_v34, %v96_v34  ;;  %v184_v45 = vmul.f32 %v88_v0, %v88_v0  ;;  %v224_v10 = vsub.f32 %v861_v3, %v96_v34  ;;  %v216_v12 = vsub.f32 %v866_v4, %v88_v0 }
  0xc8   :  { %v157_v26 = vpop.xlane.xlu1 %156  ;;  %v133_v2 = vpop.xlane.xlu0 %132  ;;  %p660_p3 = por %p659_p2, %p658_p1 }
  0xc9   :  { %v638_v27 = vpop.eup %637  ;;  %v175_v37 = vmul.f32 0.015625, %v157_v26  ;;  %v167_v38 = vmul.f32 0.015625, %v133_v2 }
  0xca   :  { %v640_v41 = vpop.eup %639  ;;  %v269_v42 = vmul.f32 %v638_v27, %v221_v30  ;;  %p661_p4 = pnand %p660_p3, %p654_p0 }
  0xcb   :  { %v207_v43 = vsub.f32 %v175_v37, %v191_v35  ;;  %v199_v46 = vsub.f32 %v167_v38, %v183_v36  ;;  %v261_v47 = vmul.f32 %v640_v41, %v213_v31 }
  0xcc   :  { %v160_v50 = vpop.xlane.xlu1 %159  ;;  %588 = vmatprep.mubr.msk.f32.mxu1 %vm31_vm0, %v269_v42  ;;  %v136_v51 = vpop.xlane.xlu0 %135 }
  0xcd   :  { %v642_v52 = vpop.eup %641  ;;  %v239_v53 = vadd.f32 1e-05, %v207_v43  ;;  %v231_v54 = vadd.f32 1e-05, %v199_v46  ;;  %v176_v55 = vmul.f32 0.015625, %v160_v50  ;;  %576 = vmatprep.mubr.msk.f32.mxu0 %vm31_vm0, %v261_v47  ;;  %v168_v58 = vmul.f32 0.015625, %v136_v51 }
  0xce   :  { %v644_v59 = vpop.eup %643  ;;  %v270_v16 = vmul.f32 %v642_v52, %v222_v32 }
  0xcf   :  { %645 = vrsqrt.f32 %v239_v53  ;;  %v208_v39 = vsub.f32 %v176_v55, %v192_v44  ;;  %v200_v48 = vsub.f32 %v168_v58, %v184_v45  ;;  %v262_v56 = vmul.f32 %v644_v59, %v214_v33 }
  0xd0   :  { %647 = vrsqrt.f32 %v231_v54  ;;  %589 = vmatmul.mubr.msk.f32.gmra.mrb[4].mxu1 %vm31_vm0, %v270_v16 }
  0xd1   :  { %v240_v40 = vadd.f32 1e-05, %v208_v39  ;;  %v232_v49 = vadd.f32 1e-05, %v200_v48  ;;  %577 = vmatmul.mubr.msk.f32.gmra.mrb[4].mxu0 %vm31_vm0, %v262_v56 }
  0xd3   :  { %649 = vrsqrt.f32 %v240_v40 }
  0xd4   :  { %651 = vrsqrt.f32 %v232_v49 }
  0xd9   :  { %v646_v17 = vpop.eup %645 }
  0xda   :  { %v648_v7 = vpop.eup %647  ;;  %v271_v8 = vmul.f32 %v646_v17, %v223_v6 }
  0xdb   :  { %v263_v9 = vmul.f32 %v648_v7, %v215_v57 }
  0xdc   :  { %591 = vmatprep.mubr.msk.f32.mxu1 %vm31_vm0, %v271_v8 }
  0xdd   :  { %v650_v11 = vpop.eup %649  ;;  %579 = vmatprep.mubr.msk.f32.mxu0 %vm31_vm0, %v263_v9 }
  0xde   :  { %v652_v13 = vpop.eup %651  ;;  %v272_v14 = vmul.f32 %v650_v11, %v224_v10 }
  0xdf   :  { %v264_v1 = vmul.f32 %v652_v13, %v216_v12 }
  0xe0   :  { %592 = vmatmul.mubr.msk.f32.gmra.mrb[6].mxu1 %vm31_vm0, %v272_v14 }
  0xe1   :  { %580 = vmatmul.mubr.msk.f32.gmra.mrb[6].mxu0 %vm31_vm0, %v264_v1 }
 0x183   :  { %v584_v61 = vpop.f32.mrb[0].mxu1 }
 0x184   :  { %v572_v3 = vpop.f32.mrb[0].mxu0  ;;  %v448_v20 = vadd.f32 %v584_v61, %v513_v60  ;;  %v442_v62 = vpop.f32.mrb[1].mxu1 }
 0x185   :  { %v408_v15 = vadd.f32 %v572_v3, %v513_v60  ;;  %v402_v21 = vpop.f32.mrb[1].mxu0  ;;  %v443_v4 = vadd.f32 %v513_v60, %v442_v62 }
 0x186   :  { %490 = vst [vmem:[#allocation2 + $0x48] sm:$0xff] %v448_v20  ;;  %v403_v63 = vadd.f32 %v513_v60, %v402_v21 }
 0x187   :  { %482 = vst [vmem:[#allocation2 + $0x8] sm:$0xff] %v408_v15  ;;  %489 = vst [vmem:[#allocation2 + $0x40] sm:$0xff] %v443_v4 }
 0x188   :  { %481 = vst [vmem:[#allocation2] sm:$0xff] %v403_v63 }
 0x193   :  { %v587_v5 = vpop.f32.mrb[2].mxu1 }
 0x194   :  { %v575_v18 = vpop.f32.mrb[2].mxu0  ;;  %v458_v19 = vadd.f32 %v587_v5, %v513_v60  ;;  %v452_v22 = vpop.f32.mrb[3].mxu1 }
 0x195   :  { %v418_v23 = vadd.f32 %v575_v18, %v513_v60  ;;  %v412_v24 = vpop.f32.mrb[3].mxu0  ;;  %v453_v25 = vadd.f32 %v513_v60, %v452_v22 }
 0x196   :  { %492 = vst [vmem:[#allocation2 + $0x58] sm:$0xff] %v458_v19  ;;  %v413_v28 = vadd.f32 %v513_v60, %v412_v24 }
 0x197   :  { %484 = vst [vmem:[#allocation2 + $0x18] sm:$0xff] %v418_v23  ;;  %491 = vst [vmem:[#allocation2 + $0x50] sm:$0xff] %v453_v25 }
 0x198   :  { %483 = vst [vmem:[#allocation2 + $0x10] sm:$0xff] %v413_v28 }
 0x1a3   :  { %v590_v29 = vpop.f32.mrb[4].mxu1 }
 0x1a4   :  { %v578_v30 = vpop.f32.mrb[4].mxu0  ;;  %v468_v31 = vadd.f32 %v590_v29, %v513_v60  ;;  %v462_v34 = vpop.f32.mrb[5].mxu1 }
 0x1a5   :  { %v428_v0 = vadd.f32 %v578_v30, %v513_v60  ;;  %v422_v26 = vpop.f32.mrb[5].mxu0  ;;  %v463_v2 = vadd.f32 %v513_v60, %v462_v34 }
 0x1a6   :  { %494 = vst [vmem:[#allocation2 + $0x68] sm:$0xff] %v468_v31  ;;  %v423_v27 = vadd.f32 %v513_v60, %v422_v26 }
 0x1a7   :  { %486 = vst [vmem:[#allocation2 + $0x28] sm:$0xff] %v428_v0  ;;  %493 = vst [vmem:[#allocation2 + $0x60] sm:$0xff] %v463_v2 }
 0x1a8   :  { %485 = vst [vmem:[#allocation2 + $0x20] sm:$0xff] %v423_v27 }
 0x1b3   :  { %v593_v35 = vpop.f32.mrb[6].mxu1 }
 0x1b4   :  { %v581_v36 = vpop.f32.mrb[6].mxu0  ;;  %v478_v37 = vadd.f32 %v593_v35, %v513_v60  ;;  %v472_v38 = vpop.f32.mrb[7].mxu1 }
 0x1b5   :  { %v438_v41 = vadd.f32 %v581_v36, %v513_v60  ;;  %v432_v42 = vpop.f32.mrb[7].mxu0  ;;  %v473_v43 = vadd.f32 %v513_v60, %v472_v38 }
 0x1b6   :  { %496 = vst [vmem:[#allocation2 + $0x78] sm:$0xff] %v478_v37  ;;  %v433_v46 = vadd.f32 %v513_v60, %v432_v42 }
 0x1b7   :  { %488 = vst [vmem:[#allocation2 + $0x38] sm:$0xff] %v438_v41  ;;  %495 = vst [vmem:[#allocation2 + $0x70] sm:$0xff] %v473_v43 }
 0x1b8   :  { %487 = vst [vmem:[#allocation2 + $0x30] sm:$0xff] %v433_v46 }
 0x1b9   :  { %664 = shalt.err (!%p661_p4)
}
 0x1ba   :  { %s665_s10 = scalar_lea.hbm %s979_s3, 2048 }
 0x1bb   :  { %p666_p5 = scmp.ne.s32.totalorder %s979_s3, %s665_s10  ;;  %p669_p6 = scmp.lt.u32.totalorder %s665_s10, %s979_s3 }
 0x1bd   :  { %p671_p7 = pnand %p669_p6, %p666_p5 }
 0x1bf   :  { %674 = shalt.err (!%p671_p7)
}
 0x1c0   :  { %s678_s15 = smov 128   ;;  %s679_s16 = smov 8  }
 0x1c1   :  { %508 = dma.vmem_to_hbm [thread:$0]  %s503_s6, 2048, %s979_s3, [#allocation3], %s678_s15, %s678_s15, %s679_s16  }
 0x1c2   :  { %675 = dma.done.wait [#allocation3], 2048  }
 0x1c3   :  { %676 = vsyncadd [#allocation3], 4294965248 }
 0x1c4   :  { %512 = vsyncpa [#allocation3], 1 }

</bundles_post_ra>
